<compile_context>
chip_gen: v6e
topology: v6e:2x2x1
jax: 0.10.0
libtpu: 0.0.40
codegen_flags: <defaults>
</compile_context>

<pallas_src>
import jax
import jax.numpy as jnp
from jax import lax
from jax.experimental import pallas as pl
from jax.experimental.pallas import tpu as pltpu


# --------------------------------- kernel -------------------------------------

def exprnn_kernel(params_ref, hat_ref, tabs_ref, o_ref):
    """Single-invocation kernel (no grid); all operands VMEM-resident."""
    G = hat_ref.shape[1]
    G2 = 2 * G

    # ---- unpack the packed parameter block ---------------------------------
    code = params_ref[0:3, 0:1]                    # (3,1) port codes (1.0 / 2.0)
    val = params_ref[0:3, 1:2]                     # (3,1) query values x[:,1]
    alphas = params_ref[0:3, 2:4]                  # (3,2) [alpha1 | alpha2]
    twT = jax.nn.sigmoid(params_ref[0:2, 4:7])     # (2,3) == sigmoid(t_weight).T
    tw2 = jax.nn.sigmoid(params_ref[0:2, 7:9])     # (2,2) == sigmoid(t_weight2)
    sw = jax.nn.sigmoid(params_ref[0:2, 9:10])     # (2,1) == sigmoid(s_weight)

    def hat(v, gi):
        # Linear-interpolation ("tent") weights of column queries v (Q,1) on
        # strictly-decreasing grid #gi.  Sentinel-padded neighbours reproduce
        # grid_sample 'border' padding exactly; all element-wise (no XLU).
        A = hat_ref[gi:gi + 1, :]                  # x_{j+1}            (1,G)
        B = hat_ref[8 + gi:9 + gi, :]              # x_{j-1}            (1,G)
        irR = hat_ref[16 + gi:17 + gi, :]          # 1/(x_j - x_{j+1})  (1,G)
        irL = hat_ref[24 + gi:25 + gi, :]          # 1/(x_{j-1} - x_j)  (1,G)
        right = (v - A) * irR                      # (Q,G)
        left = (B - v) * irL                       # (Q,G)
        return jnp.clip(jnp.minimum(right, left), 0.0, 1.0)

    # Selector folding each block-diagonal lookup back to its own column:
    # col 0 sums the first G lanes, col 1 the second G lanes.
    blk = (lax.broadcasted_iota(jnp.int32, (G2, 2), 0) >= G).astype(jnp.int32)
    col = lax.broadcasted_iota(jnp.int32, (G2, 2), 1)
    sel = (blk == col).astype(jnp.float32)         # (2G,2)

    # ---- branch 1 / branch 2 grid_sample lookups (fused, block-diagonal) ----
    codes_row = (lax.broadcasted_iota(jnp.int32, (1, 2), 1) + 1).astype(jnp.float32)
    mask12 = (code == codes_row).astype(jnp.float32)   # (3,2) [flag1 | flag2]
    zeros = jnp.zeros_like(val)
    q1 = val * mask12[:, 0:1]                      # y1[flag1] = x[:,1][flag1]
    q2 = val * mask12[:, 1:2]
    c1 = zeros + sw[0:1, 0:1]                      # sw[0] broadcast over batch
    c2 = zeros + sw[1:2, 0:1]                      # sw[1] broadcast over batch

    wr = jnp.concatenate([hat(q1, 0), hat(q2, 2)], axis=1)   # (3,2G)
    wc = jnp.concatenate([hat(c1, 1), hat(c2, 3)], axis=1)   # (3,2G)
    rows = jnp.dot(wr, tabs_ref[0:G2, :], preferred_element_type=jnp.float32)
    v12 = jnp.dot(rows * wc, sel, preferred_element_type=jnp.float32)    # (3,2)

    # y_k = flag_k * lookup_k * alpha_k ; z_k = sigmoid(t_weight).T @ y_k
    y12 = v12 * mask12 * alphas                                          # (3,2)
    z12 = jnp.dot(twT, y12, preferred_element_type=jnp.float32)          # (2,2)
    z1 = z12[:, 0:1]                               # == ravel(y1) as column (2,1)
    z2 = z12[:, 1:2]                               # == ravel(y2) as column (2,1)

    # ---- gs_soa1 / gs_soa2 lookups at (z1, z2) (fused, block-diagonal) ------
    wr2 = jnp.concatenate([hat(z1, 4), hat(z1, 6)], axis=1)  # (2,2G)
    wc2 = jnp.concatenate([hat(z2, 5), hat(z2, 7)], axis=1)  # (2,2G)
    rows2 = jnp.dot(wr2, tabs_ref[G2:2 * G2, :], preferred_element_type=jnp.float32)
    s12 = jnp.dot(rows2 * wc2, sel, preferred_element_type=jnp.float32)  # (2,2)

    # y0 = [soa1(query 0), soa2(query 1)];  y = y0 @ sigmoid(t_weight2)
    a = s12[0:1, 0:1]
    b = s12[1:2, 1:2]
    o_ref[...] = a * tw2[0:1, :] + b * tw2[1:2, :]           # (1,2)


# ------------------------------ host-side packing ------------------------------

def _pack_params(x, s_weight, t_weight, t_weight2, alpha1, alpha2):
    """Small parameter block (8,16)."""
    p = jnp.zeros((8, 16), jnp.float32)
    p = p.at[0:3, 0:2].set(x.astype(jnp.float32))
    p = p.at[0:3, 2].set(alpha1.reshape(-1).astype(jnp.float32))
    p = p.at[0:3, 3].set(alpha2.reshape(-1).astype(jnp.float32))
    p = p.at[0:2, 4:7].set(t_weight.T.astype(jnp.float32))
    p = p.at[0:2, 7:9].set(t_weight2.astype(jnp.float32))
    p = p.at[0:2, 9].set(s_weight.astype(jnp.float32))
    return p


def _pack_hat(grids):
    """(32,G): rows [A x8, B x8, 1/(x_j-x_{j+1}) x8, 1/(x_{j-1}-x_j) x8]."""
    big = jnp.asarray([1e30], jnp.float32)
    A, B, irR, irL = [], [], [], []
    for g in grids:
        g = g.astype(jnp.float32)
        a = jnp.concatenate([g[1:], -big])     # x_{j+1}, sentinel at j=G-1
        b = jnp.concatenate([big, g[:-1]])     # x_{j-1}, sentinel at j=0
        A.append(a)
        B.append(b)
        irR.append(1.0 / (g - a))
        irL.append(1.0 / (b - g))
    return jnp.stack(A + B + irR + irL, axis=0)


def _pack_tabs(t1, t2, t3, t4):
    """(4G,2G) = [blockdiag(t1,t2); blockdiag(t3,t4)]."""
    G = t1.shape[0]
    z = jnp.zeros((G, G), jnp.float32)
    bd12 = jnp.concatenate([jnp.concatenate([t1, z], axis=1),
                            jnp.concatenate([z, t2], axis=1)], axis=0)
    bd34 = jnp.concatenate([jnp.concatenate([t3, z], axis=1),
                            jnp.concatenate([z, t4], axis=1)], axis=0)
    return jnp.concatenate([bd12, bd34], axis=0).astype(jnp.float32)


def _exprnn_pallas(params, hat, tabs):
    vmem = pltpu.MemorySpace.VMEM
    return pl.pallas_call(
        exprnn_kernel,
        out_shape=jax.ShapeDtypeStruct((1, 2), jnp.float32),
        in_specs=[pl.BlockSpec(memory_space=vmem) for _ in range(3)],
        out_specs=pl.BlockSpec(memory_space=vmem),
    )(params, hat, tabs)


@jax.jit
def exprnn_forward(x, s_weight, t_weight, t_weight2,
                   alpha1, alpha2,
                   sw1_g1, sw1_g2, sw1_tab,
                   sw2_g1, sw2_g2, sw2_tab,
                   soa1_g1, soa1_g2, soa1_tab,
                   soa2_g1, soa2_g2, soa2_tab):
    # batch is forced to 3 by (y * alpha) @ t_weight, as in the torch module
    params = _pack_params(x, s_weight, t_weight, t_weight2, alpha1, alpha2)
    hat = _pack_hat([sw1_g1, sw1_g2, sw2_g1, sw2_g2,
                     soa1_g1, soa1_g2, soa2_g1, soa2_g2])
    tabs = _pack_tabs(sw1_tab, sw2_tab, soa1_tab, soa2_tab)
    return _exprnn_pallas(params, hat, tabs)     # (1,2), same as torch output


# ----------------------------- pure-JAX reference ------------------------------

def _ref_index(xq, x0):
    G = x0.shape[0]
    step = (G - 1.0) / 2.0
    xq = jnp.clip(xq, x0[-1], x0[0])
    arg = jnp.argmin(jnp.abs(xq[..., None] - x0[None, ...]), axis=-1)
    arg = arg + (x0[arg] > xq).astype(arg.dtype)
    lo = jnp.where(arg == 0, G - 1, arg - 1)
    return (x0[lo] - xq) / (x0[lo] - x0[arg]) / step + (arg - 1) / step - 1.0


def _ref_grid_sample(table, g1, g2, q1, q2):
    H, W = table.shape
    r = jnp.clip((_ref_index(q1, g1) + 1.0) / 2.0 * (H - 1), 0.0, H - 1.0)
    c = jnp.clip((_ref_index(q2, g2) + 1.0) / 2.0 * (W - 1), 0.0, W - 1.0)
    r0 = jnp.clip(jnp.floor(r), 0, H - 1)
    c0 = jnp.clip(jnp.floor(c), 0, W - 1)
    r1 = jnp.clip(r0 + 1, 0, H - 1)
    c1 = jnp.clip(c0 + 1, 0, W - 1)
    fr, fc = r - r0, c - c0
    r0i, r1i = r0.astype(jnp.int32), r1.astype(jnp.int32)
    c0i, c1i = c0.astype(jnp.int32), c1.astype(jnp.int32)
    return ((1 - fr) * (1 - fc) * table[r0i, c0i] + (1 - fr) * fc * table[r0i, c1i]
            + fr * (1 - fc) * table[r1i, c0i] + fr * fc * table[r1i, c1i])


def exprnn_reference(x, s_weight, t_weight, t_weight2, alpha1, alpha2,
                     sw1_g1, sw1_g2, sw1_tab, sw2_g1, sw2_g2, sw2_tab,
                     soa1_g1, soa1_g2, soa1_tab, soa2_g1, soa2_g2, soa2_tab):
    sw = jax.nn.sigmoid(s_weight)
    tw = jax.nn.sigmoid(t_weight)
    flag1, flag2 = x[:, 0] == 1.0, x[:, 0] == 2.0

    y1 = jnp.where(flag1, x[:, 1], 0.0)
    v1 = _ref_grid_sample(sw1_tab, sw1_g1, sw1_g2, y1, jnp.full_like(y1, sw[0]))
    y1 = jnp.where(flag1, v1, 0.0) * alpha1              # (1,3)
    y1 = y1 @ tw                                         # (1,2)

    y2 = jnp.where(flag2, x[:, 1], 0.0)
    v2 = _ref_grid_sample(sw2_tab, sw2_g1, sw2_g2, y2, jnp.full_like(y2, sw[1]))
    y2 = jnp.where(flag2, v2, 0.0) * alpha2
    y2 = y2 @ tw                                         # (1,2)

    y1s = _ref_grid_sample(soa1_tab, soa1_g1, soa1_g2, y1.ravel(), y2.ravel()).reshape(-1, 2)
    y2s = _ref_grid_sample(soa2_tab, soa2_g1, soa2_g2, y1.ravel(), y2.ravel()).reshape(-1, 2)
    y0 = jnp.stack([y1s[:, 0], y2s[:, 1]], axis=-1)      # (1,2)
    return y0 @ jax.nn.sigmoid(t_weight2)                # (1,2)


# ------------------------------------ main --------------------------------------

if __name__ == "__main__":
    key = jax.random.PRNGKey(0)
    ks = jax.random.split(key, 16)

    N = 3      # batch forced to 3 by the (y * alpha) @ t_weight broadcasting
    G = 16     # lookup-grid resolution of each synthetic grid_sample table

    # inputs: x[:,0] is the port code (1 or 2), x[:,1] the query value
    codes = jnp.array([1.0, 2.0, 1.0], dtype=jnp.float32)
    vals = jax.random.uniform(ks[0], (N,), jnp.float32, 0.3, 1.7)
    x = jnp.stack([codes, vals], axis=-1)                      # (3,2)

    # RNN parameters (torch.randn in __init__)
    s_weight = jax.random.normal(ks[1], (2,), jnp.float32)
    t_weight = jax.random.normal(ks[2], (3, 2), jnp.float32)
    t_weight2 = jax.random.normal(ks[3], (2, 2), jnp.float32)

    # synthetic grid_sample tables (strictly decreasing coordinate grids)
    def dec_grid(hi, lo):
        return jnp.linspace(hi, lo, G, dtype=jnp.float32)

    sw1_g1, sw1_g2 = dec_grid(2.0, 0.0), dec_grid(1.0, 0.0)
    sw2_g1, sw2_g2 = dec_grid(2.0, 0.0), dec_grid(1.0, 0.0)
    soa1_g1, soa1_g2 = dec_grid(4.0, -4.0), dec_grid(4.0, -4.0)
    soa2_g1, soa2_g2 = dec_grid(4.0, -4.0), dec_grid(4.0, -4.0)
    sw1_tab = jax.random.normal(ks[4], (G, G), jnp.float32)
    sw2_tab = jax.random.normal(ks[5], (G, G), jnp.float32)
    soa1_tab = jax.random.normal(ks[6], (G, G), jnp.float32)
    soa2_tab = jax.random.normal(ks[7], (G, G), jnp.float32)
    alpha1 = jax.random.uniform(ks[8], (1, N), jnp.float32, 0.5, 1.5)
    alpha2 = jax.random.uniform(ks[9], (1, N), jnp.float32, 0.5, 1.5)

    args = (x, s_weight, t_weight, t_weight2, alpha1, alpha2,
            sw1_g1, sw1_g2, sw1_tab, sw2_g1, sw2_g2, sw2_tab,
            soa1_g1, soa1_g2, soa1_tab, soa2_g1, soa2_g2, soa2_tab)

    y = exprnn_forward(*args)
    y = jax.block_until_ready(y)

    y_ref = exprnn_reference(*args)
    if not jnp.allclose(y, y_ref, atol=1e-4, rtol=1e-4):
        raise AssertionError(f"mismatch: pallas={y} ref={y_ref}")

    print("KERNEL_OK")
</pallas_src>

<mosaic_0001>
module attributes {stable_mosaic.version = 11 : i64} {
  func.func @exprnn_kernel(%arg0: memref<8x16xf32, #tpu.memory_space<vmem>>, %arg1: memref<32x16xf32, #tpu.memory_space<vmem>>, %arg2: memref<64x32xf32, #tpu.memory_space<vmem>>, %arg3: memref<1x2xf32, #tpu.memory_space<vmem>>) attributes {dimension_semantics = [], scalar_prefetch = 0 : i64, scratch_operands = 0 : i64, tpu.core_type = #tpu.core_type<tc>} {
    %c0 = arith.constant 0 : index
    %c0_0 = arith.constant 0 : index
    %0 = vector.load %arg0[%c0, %c0_0] : memref<8x16xf32, #tpu.memory_space<vmem>>, vector<3x1xf32>
    %c0_1 = arith.constant 0 : index
    %c1 = arith.constant 1 : index
    %1 = vector.load %arg0[%c0_1, %c1] : memref<8x16xf32, #tpu.memory_space<vmem>>, vector<3x1xf32>
    %c0_2 = arith.constant 0 : index
    %c2 = arith.constant 2 : index
    %2 = vector.load %arg0[%c0_2, %c2] : memref<8x16xf32, #tpu.memory_space<vmem>>, vector<3x2xf32>
    %c0_3 = arith.constant 0 : index
    %c4 = arith.constant 4 : index
    %3 = vector.load %arg0[%c0_3, %c4] : memref<8x16xf32, #tpu.memory_space<vmem>>, vector<2x3xf32>
    %4 = arith.negf %3 : vector<2x3xf32>
    %5 = math.exp %4 : vector<2x3xf32>
    %cst = arith.constant 1.000000e+00 : f32
    %6 = vector.broadcast %cst : f32 to vector<2x3xf32>
    %7 = arith.addf %6, %5 : vector<2x3xf32>
    %8 = arith.divf %6, %7 : vector<2x3xf32>
    %c0_4 = arith.constant 0 : index
    %c7 = arith.constant 7 : index
    %9 = vector.load %arg0[%c0_4, %c7] : memref<8x16xf32, #tpu.memory_space<vmem>>, vector<2x2xf32>
    %10 = arith.negf %9 : vector<2x2xf32>
    %11 = math.exp %10 : vector<2x2xf32>
    %cst_5 = arith.constant 1.000000e+00 : f32
    %12 = vector.broadcast %cst_5 : f32 to vector<2x2xf32>
    %13 = arith.addf %12, %11 : vector<2x2xf32>
    %14 = arith.divf %12, %13 : vector<2x2xf32>
    %c0_6 = arith.constant 0 : index
    %c9 = arith.constant 9 : index
    %15 = vector.load %arg0[%c0_6, %c9] : memref<8x16xf32, #tpu.memory_space<vmem>>, vector<2x1xf32>
    %16 = arith.negf %15 : vector<2x1xf32>
    %17 = math.exp %16 : vector<2x1xf32>
    %cst_7 = arith.constant 1.000000e+00 : f32
    %18 = vector.broadcast %cst_7 : f32 to vector<2x1xf32>
    %19 = arith.addf %18, %17 : vector<2x1xf32>
    %20 = arith.divf %18, %19 : vector<2x1xf32>
    %21 = tpu.iota {dimensions = array<i32: 0>} : vector<32x2xi32>
    %c16_i32 = arith.constant 16 : i32
    %22 = vector.broadcast %c16_i32 : i32 to vector<32x2xi32>
    %23 = arith.cmpi sge, %21, %22 : vector<32x2xi32>
    %24 = arith.extui %23 : vector<32x2xi1> to vector<32x2xi32>
    %25 = tpu.iota {dimensions = array<i32: 1>} : vector<32x2xi32>
    %26 = arith.cmpi eq, %24, %25 : vector<32x2xi32>
    %27 = arith.extui %26 : vector<32x2xi1> to vector<32x2xi32>
    %28 = arith.sitofp %27 : vector<32x2xi32> to vector<32x2xf32>
    %29 = tpu.iota {dimensions = array<i32: 1>} : vector<1x2xi32>
    %c1_i32 = arith.constant 1 : i32
    %30 = vector.broadcast %c1_i32 : i32 to vector<1x2xi32>
    %31 = arith.addi %29, %30 : vector<1x2xi32>
    %32 = arith.sitofp %31 : vector<1x2xi32> to vector<1x2xf32>
    %33 = vector.broadcast %0 : vector<3x1xf32> to vector<3x2xf32>
    %34 = vector.broadcast %32 : vector<1x2xf32> to vector<3x2xf32>
    %35 = arith.cmpf oeq, %33, %34 : vector<3x2xf32>
    %36 = arith.extui %35 : vector<3x2xi1> to vector<3x2xi32>
    %37 = arith.sitofp %36 : vector<3x2xi32> to vector<3x2xf32>
    %cst_8 = arith.constant 0.000000e+00 : f32
    %38 = vector.broadcast %cst_8 : f32 to vector<3x1xf32>
    %39 = vector.extract_strided_slice %37 {offsets = [0, 0], sizes = [3, 1], strides = [1, 1]} : vector<3x2xf32> to vector<3x1xf32>
    %40 = arith.mulf %1, %39 : vector<3x1xf32>
    %41 = vector.extract_strided_slice %37 {offsets = [0, 1], sizes = [3, 1], strides = [1, 1]} : vector<3x2xf32> to vector<3x1xf32>
    %42 = arith.mulf %1, %41 : vector<3x1xf32>
    %43 = vector.extract_strided_slice %20 {offsets = [0, 0], sizes = [1, 1], strides = [1, 1]} : vector<2x1xf32> to vector<1x1xf32>
    %44 = vector.broadcast %43 : vector<1x1xf32> to vector<3x1xf32>
    %45 = arith.addf %38, %44 : vector<3x1xf32>
    %46 = vector.extract_strided_slice %20 {offsets = [1, 0], sizes = [1, 1], strides = [1, 1]} : vector<2x1xf32> to vector<1x1xf32>
    %47 = vector.broadcast %46 : vector<1x1xf32> to vector<3x1xf32>
    %48 = arith.addf %38, %47 : vector<3x1xf32>
    %c0_9 = arith.constant 0 : index
    %c0_10 = arith.constant 0 : index
    %49 = vector.load %arg1[%c0_9, %c0_10] : memref<32x16xf32, #tpu.memory_space<vmem>>, vector<1x16xf32>
    %c8 = arith.constant 8 : index
    %c0_11 = arith.constant 0 : index
    %50 = vector.load %arg1[%c8, %c0_11] : memref<32x16xf32, #tpu.memory_space<vmem>>, vector<1x16xf32>
    %c16 = arith.constant 16 : index
    %c0_12 = arith.constant 0 : index
    %51 = vector.load %arg1[%c16, %c0_12] : memref<32x16xf32, #tpu.memory_space<vmem>>, vector<1x16xf32>
    %c24 = arith.constant 24 : index
    %c0_13 = arith.constant 0 : index
    %52 = vector.load %arg1[%c24, %c0_13] : memref<32x16xf32, #tpu.memory_space<vmem>>, vector<1x16xf32>
    %53 = vector.broadcast %40 : vector<3x1xf32> to vector<3x16xf32>
    %54 = vector.broadcast %49 : vector<1x16xf32> to vector<3x16xf32>
    %55 = arith.subf %53, %54 : vector<3x16xf32>
    %56 = vector.broadcast %51 : vector<1x16xf32> to vector<3x16xf32>
    %57 = arith.mulf %55, %56 : vector<3x16xf32>
    %58 = vector.broadcast %50 : vector<1x16xf32> to vector<3x16xf32>
    %59 = vector.broadcast %40 : vector<3x1xf32> to vector<3x16xf32>
    %60 = arith.subf %58, %59 : vector<3x16xf32>
    %61 = vector.broadcast %52 : vector<1x16xf32> to vector<3x16xf32>
    %62 = arith.mulf %60, %61 : vector<3x16xf32>
    %63 = arith.minimumf %57, %62 : vector<3x16xf32>
    %cst_14 = arith.constant 0.000000e+00 : f32
    %cst_15 = arith.constant 1.000000e+00 : f32
    %64 = vector.broadcast %cst_14 : f32 to vector<3x16xf32>
    %65 = arith.maximumf %64, %63 : vector<3x16xf32>
    %66 = vector.broadcast %cst_15 : f32 to vector<3x16xf32>
    %67 = arith.minimumf %66, %65 : vector<3x16xf32>
    %c2_16 = arith.constant 2 : index
    %c0_17 = arith.constant 0 : index
    %68 = vector.load %arg1[%c2_16, %c0_17] : memref<32x16xf32, #tpu.memory_space<vmem>>, vector<1x16xf32>
    %c10 = arith.constant 10 : index
    %c0_18 = arith.constant 0 : index
    %69 = vector.load %arg1[%c10, %c0_18] : memref<32x16xf32, #tpu.memory_space<vmem>>, vector<1x16xf32>
    %c18 = arith.constant 18 : index
    %c0_19 = arith.constant 0 : index
    %70 = vector.load %arg1[%c18, %c0_19] : memref<32x16xf32, #tpu.memory_space<vmem>>, vector<1x16xf32>
    %c26 = arith.constant 26 : index
    %c0_20 = arith.constant 0 : index
    %71 = vector.load %arg1[%c26, %c0_20] : memref<32x16xf32, #tpu.memory_space<vmem>>, vector<1x16xf32>
    %72 = vector.broadcast %42 : vector<3x1xf32> to vector<3x16xf32>
    %73 = vector.broadcast %68 : vector<1x16xf32> to vector<3x16xf32>
    %74 = arith.subf %72, %73 : vector<3x16xf32>
    %75 = vector.broadcast %70 : vector<1x16xf32> to vector<3x16xf32>
    %76 = arith.mulf %74, %75 : vector<3x16xf32>
    %77 = vector.broadcast %69 : vector<1x16xf32> to vector<3x16xf32>
    %78 = vector.broadcast %42 : vector<3x1xf32> to vector<3x16xf32>
    %79 = arith.subf %77, %78 : vector<3x16xf32>
    %80 = vector.broadcast %71 : vector<1x16xf32> to vector<3x16xf32>
    %81 = arith.mulf %79, %80 : vector<3x16xf32>
    %82 = arith.minimumf %76, %81 : vector<3x16xf32>
    %cst_21 = arith.constant 0.000000e+00 : f32
    %cst_22 = arith.constant 1.000000e+00 : f32
    %83 = vector.broadcast %cst_21 : f32 to vector<3x16xf32>
    %84 = arith.maximumf %83, %82 : vector<3x16xf32>
    %85 = vector.broadcast %cst_22 : f32 to vector<3x16xf32>
    %86 = arith.minimumf %85, %84 : vector<3x16xf32>
    %87 = tpu.concatenate %67, %86 in 1 : vector<3x16xf32>, vector<3x16xf32> -> vector<3x32xf32>
    %c1_23 = arith.constant 1 : index
    %c0_24 = arith.constant 0 : index
    %88 = vector.load %arg1[%c1_23, %c0_24] : memref<32x16xf32, #tpu.memory_space<vmem>>, vector<1x16xf32>
    %c9_25 = arith.constant 9 : index
    %c0_26 = arith.constant 0 : index
    %89 = vector.load %arg1[%c9_25, %c0_26] : memref<32x16xf32, #tpu.memory_space<vmem>>, vector<1x16xf32>
    %c17 = arith.constant 17 : index
    %c0_27 = arith.constant 0 : index
    %90 = vector.load %arg1[%c17, %c0_27] : memref<32x16xf32, #tpu.memory_space<vmem>>, vector<1x16xf32>
    %c25 = arith.constant 25 : index
    %c0_28 = arith.constant 0 : index
    %91 = vector.load %arg1[%c25, %c0_28] : memref<32x16xf32, #tpu.memory_space<vmem>>, vector<1x16xf32>
    %92 = vector.broadcast %45 : vector<3x1xf32> to vector<3x16xf32>
    %93 = vector.broadcast %88 : vector<1x16xf32> to vector<3x16xf32>
    %94 = arith.subf %92, %93 : vector<3x16xf32>
    %95 = vector.broadcast %90 : vector<1x16xf32> to vector<3x16xf32>
    %96 = arith.mulf %94, %95 : vector<3x16xf32>
    %97 = vector.broadcast %89 : vector<1x16xf32> to vector<3x16xf32>
    %98 = vector.broadcast %45 : vector<3x1xf32> to vector<3x16xf32>
    %99 = arith.subf %97, %98 : vector<3x16xf32>
    %100 = vector.broadcast %91 : vector<1x16xf32> to vector<3x16xf32>
    %101 = arith.mulf %99, %100 : vector<3x16xf32>
    %102 = arith.minimumf %96, %101 : vector<3x16xf32>
    %cst_29 = arith.constant 0.000000e+00 : f32
    %cst_30 = arith.constant 1.000000e+00 : f32
    %103 = vector.broadcast %cst_29 : f32 to vector<3x16xf32>
    %104 = arith.maximumf %103, %102 : vector<3x16xf32>
    %105 = vector.broadcast %cst_30 : f32 to vector<3x16xf32>
    %106 = arith.minimumf %105, %104 : vector<3x16xf32>
    %c3 = arith.constant 3 : index
    %c0_31 = arith.constant 0 : index
    %107 = vector.load %arg1[%c3, %c0_31] : memref<32x16xf32, #tpu.memory_space<vmem>>, vector<1x16xf32>
    %c11 = arith.constant 11 : index
    %c0_32 = arith.constant 0 : index
    %108 = vector.load %arg1[%c11, %c0_32] : memref<32x16xf32, #tpu.memory_space<vmem>>, vector<1x16xf32>
    %c19 = arith.constant 19 : index
    %c0_33 = arith.constant 0 : index
    %109 = vector.load %arg1[%c19, %c0_33] : memref<32x16xf32, #tpu.memory_space<vmem>>, vector<1x16xf32>
    %c27 = arith.constant 27 : index
    %c0_34 = arith.constant 0 : index
    %110 = vector.load %arg1[%c27, %c0_34] : memref<32x16xf32, #tpu.memory_space<vmem>>, vector<1x16xf32>
    %111 = vector.broadcast %48 : vector<3x1xf32> to vector<3x16xf32>
    %112 = vector.broadcast %107 : vector<1x16xf32> to vector<3x16xf32>
    %113 = arith.subf %111, %112 : vector<3x16xf32>
    %114 = vector.broadcast %109 : vector<1x16xf32> to vector<3x16xf32>
    %115 = arith.mulf %113, %114 : vector<3x16xf32>
    %116 = vector.broadcast %108 : vector<1x16xf32> to vector<3x16xf32>
    %117 = vector.broadcast %48 : vector<3x1xf32> to vector<3x16xf32>
    %118 = arith.subf %116, %117 : vector<3x16xf32>
    %119 = vector.broadcast %110 : vector<1x16xf32> to vector<3x16xf32>
    %120 = arith.mulf %118, %119 : vector<3x16xf32>
    %121 = arith.minimumf %115, %120 : vector<3x16xf32>
    %cst_35 = arith.constant 0.000000e+00 : f32
    %cst_36 = arith.constant 1.000000e+00 : f32
    %122 = vector.broadcast %cst_35 : f32 to vector<3x16xf32>
    %123 = arith.maximumf %122, %121 : vector<3x16xf32>
    %124 = vector.broadcast %cst_36 : f32 to vector<3x16xf32>
    %125 = arith.minimumf %124, %123 : vector<3x16xf32>
    %126 = tpu.concatenate %106, %125 in 1 : vector<3x16xf32>, vector<3x16xf32> -> vector<3x32xf32>
    %c0_37 = arith.constant 0 : index
    %c0_38 = arith.constant 0 : index
    %127 = vector.load %arg2[%c0_37, %c0_38] : memref<64x32xf32, #tpu.memory_space<vmem>>, vector<32x32xf32>
    %cst_39 = arith.constant dense<0.000000e+00> : vector<3x32xf32>
    %128 = tpu.matmul %87, %127, %cst_39 {dimension_numbers = #tpu.dot_dimension_numbers<[1], [0], [0], [1], [0, 0, 1, 1], [], []>} : vector<3x32xf32>, vector<32x32xf32>, vector<3x32xf32> -> vector<3x32xf32>
    %129 = arith.mulf %128, %126 : vector<3x32xf32>
    %cst_40 = arith.constant dense<0.000000e+00> : vector<3x2xf32>
    %130 = tpu.matmul %129, %28, %cst_40 {dimension_numbers = #tpu.dot_dimension_numbers<[1], [0], [0], [1], [0, 0, 1, 1], [], []>} : vector<3x32xf32>, vector<32x2xf32>, vector<3x2xf32> -> vector<3x2xf32>
    %131 = arith.mulf %130, %37 : vector<3x2xf32>
    %132 = arith.mulf %131, %2 : vector<3x2xf32>
    %cst_41 = arith.constant dense<0.000000e+00> : vector<2x2xf32>
    %133 = tpu.matmul %8, %132, %cst_41 {dimension_numbers = #tpu.dot_dimension_numbers<[1], [0], [0], [1], [0, 0, 1, 1], [], []>} : vector<2x3xf32>, vector<3x2xf32>, vector<2x2xf32> -> vector<2x2xf32>
    %134 = vector.extract_strided_slice %133 {offsets = [0, 0], sizes = [2, 1], strides = [1, 1]} : vector<2x2xf32> to vector<2x1xf32>
    %135 = vector.extract_strided_slice %133 {offsets = [0, 1], sizes = [2, 1], strides = [1, 1]} : vector<2x2xf32> to vector<2x1xf32>
    %c4_42 = arith.constant 4 : index
    %c0_43 = arith.constant 0 : index
    %136 = vector.load %arg1[%c4_42, %c0_43] : memref<32x16xf32, #tpu.memory_space<vmem>>, vector<1x16xf32>
    %c12 = arith.constant 12 : index
    %c0_44 = arith.constant 0 : index
    %137 = vector.load %arg1[%c12, %c0_44] : memref<32x16xf32, #tpu.memory_space<vmem>>, vector<1x16xf32>
    %c20 = arith.constant 20 : index
    %c0_45 = arith.constant 0 : index
    %138 = vector.load %arg1[%c20, %c0_45] : memref<32x16xf32, #tpu.memory_space<vmem>>, vector<1x16xf32>
    %c28 = arith.constant 28 : index
    %c0_46 = arith.constant 0 : index
    %139 = vector.load %arg1[%c28, %c0_46] : memref<32x16xf32, #tpu.memory_space<vmem>>, vector<1x16xf32>
    %140 = vector.broadcast %134 : vector<2x1xf32> to vector<2x16xf32>
    %141 = vector.broadcast %136 : vector<1x16xf32> to vector<2x16xf32>
    %142 = arith.subf %140, %141 : vector<2x16xf32>
    %143 = vector.broadcast %138 : vector<1x16xf32> to vector<2x16xf32>
    %144 = arith.mulf %142, %143 : vector<2x16xf32>
    %145 = vector.broadcast %137 : vector<1x16xf32> to vector<2x16xf32>
    %146 = vector.broadcast %134 : vector<2x1xf32> to vector<2x16xf32>
    %147 = arith.subf %145, %146 : vector<2x16xf32>
    %148 = vector.broadcast %139 : vector<1x16xf32> to vector<2x16xf32>
    %149 = arith.mulf %147, %148 : vector<2x16xf32>
    %150 = arith.minimumf %144, %149 : vector<2x16xf32>
    %cst_47 = arith.constant 0.000000e+00 : f32
    %cst_48 = arith.constant 1.000000e+00 : f32
    %151 = vector.broadcast %cst_47 : f32 to vector<2x16xf32>
    %152 = arith.maximumf %151, %150 : vector<2x16xf32>
    %153 = vector.broadcast %cst_48 : f32 to vector<2x16xf32>
    %154 = arith.minimumf %153, %152 : vector<2x16xf32>
    %c6 = arith.constant 6 : index
    %c0_49 = arith.constant 0 : index
    %155 = vector.load %arg1[%c6, %c0_49] : memref<32x16xf32, #tpu.memory_space<vmem>>, vector<1x16xf32>
    %c14 = arith.constant 14 : index
    %c0_50 = arith.constant 0 : index
    %156 = vector.load %arg1[%c14, %c0_50] : memref<32x16xf32, #tpu.memory_space<vmem>>, vector<1x16xf32>
    %c22 = arith.constant 22 : index
    %c0_51 = arith.constant 0 : index
    %157 = vector.load %arg1[%c22, %c0_51] : memref<32x16xf32, #tpu.memory_space<vmem>>, vector<1x16xf32>
    %c30 = arith.constant 30 : index
    %c0_52 = arith.constant 0 : index
    %158 = vector.load %arg1[%c30, %c0_52] : memref<32x16xf32, #tpu.memory_space<vmem>>, vector<1x16xf32>
    %159 = vector.broadcast %134 : vector<2x1xf32> to vector<2x16xf32>
    %160 = vector.broadcast %155 : vector<1x16xf32> to vector<2x16xf32>
    %161 = arith.subf %159, %160 : vector<2x16xf32>
    %162 = vector.broadcast %157 : vector<1x16xf32> to vector<2x16xf32>
    %163 = arith.mulf %161, %162 : vector<2x16xf32>
    %164 = vector.broadcast %156 : vector<1x16xf32> to vector<2x16xf32>
    %165 = vector.broadcast %134 : vector<2x1xf32> to vector<2x16xf32>
    %166 = arith.subf %164, %165 : vector<2x16xf32>
    %167 = vector.broadcast %158 : vector<1x16xf32> to vector<2x16xf32>
    %168 = arith.mulf %166, %167 : vector<2x16xf32>
    %169 = arith.minimumf %163, %168 : vector<2x16xf32>
    %cst_53 = arith.constant 0.000000e+00 : f32
    %cst_54 = arith.constant 1.000000e+00 : f32
    %170 = vector.broadcast %cst_53 : f32 to vector<2x16xf32>
    %171 = arith.maximumf %170, %169 : vector<2x16xf32>
    %172 = vector.broadcast %cst_54 : f32 to vector<2x16xf32>
    %173 = arith.minimumf %172, %171 : vector<2x16xf32>
    %174 = tpu.concatenate %154, %173 in 1 : vector<2x16xf32>, vector<2x16xf32> -> vector<2x32xf32>
    %c5 = arith.constant 5 : index
    %c0_55 = arith.constant 0 : index
    %175 = vector.load %arg1[%c5, %c0_55] : memref<32x16xf32, #tpu.memory_space<vmem>>, vector<1x16xf32>
    %c13 = arith.constant 13 : index
    %c0_56 = arith.constant 0 : index
    %176 = vector.load %arg1[%c13, %c0_56] : memref<32x16xf32, #tpu.memory_space<vmem>>, vector<1x16xf32>
    %c21 = arith.constant 21 : index
    %c0_57 = arith.constant 0 : index
    %177 = vector.load %arg1[%c21, %c0_57] : memref<32x16xf32, #tpu.memory_space<vmem>>, vector<1x16xf32>
    %c29 = arith.constant 29 : index
    %c0_58 = arith.constant 0 : index
    %178 = vector.load %arg1[%c29, %c0_58] : memref<32x16xf32, #tpu.memory_space<vmem>>, vector<1x16xf32>
    %179 = vector.broadcast %135 : vector<2x1xf32> to vector<2x16xf32>
    %180 = vector.broadcast %175 : vector<1x16xf32> to vector<2x16xf32>
    %181 = arith.subf %179, %180 : vector<2x16xf32>
    %182 = vector.broadcast %177 : vector<1x16xf32> to vector<2x16xf32>
    %183 = arith.mulf %181, %182 : vector<2x16xf32>
    %184 = vector.broadcast %176 : vector<1x16xf32> to vector<2x16xf32>
    %185 = vector.broadcast %135 : vector<2x1xf32> to vector<2x16xf32>
    %186 = arith.subf %184, %185 : vector<2x16xf32>
    %187 = vector.broadcast %178 : vector<1x16xf32> to vector<2x16xf32>
    %188 = arith.mulf %186, %187 : vector<2x16xf32>
    %189 = arith.minimumf %183, %188 : vector<2x16xf32>
    %cst_59 = arith.constant 0.000000e+00 : f32
    %cst_60 = arith.constant 1.000000e+00 : f32
    %190 = vector.broadcast %cst_59 : f32 to vector<2x16xf32>
    %191 = arith.maximumf %190, %189 : vector<2x16xf32>
    %192 = vector.broadcast %cst_60 : f32 to vector<2x16xf32>
    %193 = arith.minimumf %192, %191 : vector<2x16xf32>
    %c7_61 = arith.constant 7 : index
    %c0_62 = arith.constant 0 : index
    %194 = vector.load %arg1[%c7_61, %c0_62] : memref<32x16xf32, #tpu.memory_space<vmem>>, vector<1x16xf32>
    %c15 = arith.constant 15 : index
    %c0_63 = arith.constant 0 : index
    %195 = vector.load %arg1[%c15, %c0_63] : memref<32x16xf32, #tpu.memory_space<vmem>>, vector<1x16xf32>
    %c23 = arith.constant 23 : index
    %c0_64 = arith.constant 0 : index
    %196 = vector.load %arg1[%c23, %c0_64] : memref<32x16xf32, #tpu.memory_space<vmem>>, vector<1x16xf32>
    %c31 = arith.constant 31 : index
    %c0_65 = arith.constant 0 : index
    %197 = vector.load %arg1[%c31, %c0_65] : memref<32x16xf32, #tpu.memory_space<vmem>>, vector<1x16xf32>
    %198 = vector.broadcast %135 : vector<2x1xf32> to vector<2x16xf32>
    %199 = vector.broadcast %194 : vector<1x16xf32> to vector<2x16xf32>
    %200 = arith.subf %198, %199 : vector<2x16xf32>
    %201 = vector.broadcast %196 : vector<1x16xf32> to vector<2x16xf32>
    %202 = arith.mulf %200, %201 : vector<2x16xf32>
    %203 = vector.broadcast %195 : vector<1x16xf32> to vector<2x16xf32>
    %204 = vector.broadcast %135 : vector<2x1xf32> to vector<2x16xf32>
    %205 = arith.subf %203, %204 : vector<2x16xf32>
    %206 = vector.broadcast %197 : vector<1x16xf32> to vector<2x16xf32>
    %207 = arith.mulf %205, %206 : vector<2x16xf32>
    %208 = arith.minimumf %202, %207 : vector<2x16xf32>
    %cst_66 = arith.constant 0.000000e+00 : f32
    %cst_67 = arith.constant 1.000000e+00 : f32
    %209 = vector.broadcast %cst_66 : f32 to vector<2x16xf32>
    %210 = arith.maximumf %209, %208 : vector<2x16xf32>
    %211 = vector.broadcast %cst_67 : f32 to vector<2x16xf32>
    %212 = arith.minimumf %211, %210 : vector<2x16xf32>
    %213 = tpu.concatenate %193, %212 in 1 : vector<2x16xf32>, vector<2x16xf32> -> vector<2x32xf32>
    %c32 = arith.constant 32 : index
    %c0_68 = arith.constant 0 : index
    %214 = vector.load %arg2[%c32, %c0_68] : memref<64x32xf32, #tpu.memory_space<vmem>>, vector<32x32xf32>
    %cst_69 = arith.constant dense<0.000000e+00> : vector<2x32xf32>
    %215 = tpu.matmul %174, %214, %cst_69 {dimension_numbers = #tpu.dot_dimension_numbers<[1], [0], [0], [1], [0, 0, 1, 1], [], []>} : vector<2x32xf32>, vector<32x32xf32>, vector<2x32xf32> -> vector<2x32xf32>
    %216 = arith.mulf %215, %213 : vector<2x32xf32>
    %cst_70 = arith.constant dense<0.000000e+00> : vector<2x2xf32>
    %217 = tpu.matmul %216, %28, %cst_70 {dimension_numbers = #tpu.dot_dimension_numbers<[1], [0], [0], [1], [0, 0, 1, 1], [], []>} : vector<2x32xf32>, vector<32x2xf32>, vector<2x2xf32> -> vector<2x2xf32>
    %218 = vector.extract_strided_slice %217 {offsets = [0, 0], sizes = [1, 1], strides = [1, 1]} : vector<2x2xf32> to vector<1x1xf32>
    %219 = vector.extract_strided_slice %217 {offsets = [1, 1], sizes = [1, 1], strides = [1, 1]} : vector<2x2xf32> to vector<1x1xf32>
    %220 = vector.extract_strided_slice %14 {offsets = [0, 0], sizes = [1, 2], strides = [1, 1]} : vector<2x2xf32> to vector<1x2xf32>
    %221 = vector.broadcast %218 : vector<1x1xf32> to vector<1x2xf32>
    %222 = arith.mulf %221, %220 : vector<1x2xf32>
    %223 = vector.extract_strided_slice %14 {offsets = [1, 0], sizes = [1, 2], strides = [1, 1]} : vector<2x2xf32> to vector<1x2xf32>
    %224 = vector.broadcast %219 : vector<1x1xf32> to vector<1x2xf32>
    %225 = arith.mulf %224, %223 : vector<1x2xf32>
    %226 = arith.addf %222, %225 : vector<1x2xf32>
    %c0_71 = arith.constant 0 : index
    %c0_72 = arith.constant 0 : index
    %227 = vector.load %arg3[%c0_71, %c0_72] : memref<1x2xf32, #tpu.memory_space<vmem>>, vector<1x2xf32>
    tpu.vector_store %arg3[%c0_71, %c0_72], %226 {strides = array<i32>} : memref<1x2xf32, #tpu.memory_space<vmem>>, vector<1x2xf32>,
    return
  }
}

</mosaic_0001>

<bundles_post_ra>
// kernel: exprnn_forward.1
= control target key start
LH: loop header
LB: loop body
LE: loop exit
PB: predicated region body
PF: predicated region fallthrough
CT: control target
= control target key end

     0   :  { %v938_v1 = vmov 0   ;;  %v939_v2 = vmov 1   ;;  %s1192_s0 = inlined_call_operand.vmem [shape: f32[8,16], index: 0, kind: input, shape index: {}]   ;;  %s1193_s1 = inlined_call_operand.vmem [shape: f32[32,16], index: 1, kind: input, shape index: {}]   ;;  %s1194_s2 = inlined_call_operand.vmem [shape: f32[64,32], index: 2, kind: input, shape index: {}]   ;;  %s1195_s3 = inlined_call_operand.hbm [shape: f32[1,2], index: 3, kind: output, shape index: {}]  }
   0x1   :  { %v973_v0 = vld [vmem:[%s1192_s0] sm:$0x7]  ;;  %904 = vset.pattern.permute.xlu0 %v938_v1  ;;  %905 = vset.pattern.permute.xlu1 %v939_v2 }
   0x2   :  { %8 = vsyncpa [#allocation3], 0  ;;  %54 = vperm.xlu0 %904, %v973_v0   ;;  %v940_v3 = vmov 0.0   ;;  %v36_v4 = vlaneseq  ;;  %s941_s14 = smov 1   ;;  %v942_v11 = vmov 9   ;;  %v218_v21 = vld [vmem:[%s1194_s2 + $0x18] sm:$0xff] }
   0x3   :  { %843 = vmatprep.subr.mxu0 %v940_v3  ;;  %854 = vmatprep.subr.mxu1 %v940_v3  ;;  %v16_v12 = vld [vmem:[%s1192_s0] sm:$0x3]  ;;  %v217_v23 = vld [vmem:[%s1194_s2 + $0x10] sm:$0xff]  ;;  %v216_v24 = vld [vmem:[%s1194_s2 + $0x8] sm:$0xff]  ;;  %vm943_vm1 = vmmov 0   ;;  %s944_s5 = smov 16  }
   0x4   :  { %v980_v5 = vand.u32 127, %v36_v4  ;;  %v765_v13 = vmul.f32 -1.442695, %v16_v12  ;;  %v67_v16 = vshrl.u32 %v36_v4, 7  ;;  %844 = vmatpush3.msra.mxu0 %v218_v21  ;;  %v215_v25 = vld [vmem:[%s1194_s2] sm:$0xff]  ;;  %851 = vmatprep.mubr.msk.f32.mxu0 %vm943_vm1, %v940_v3  ;;  %v945_v40 = vmov 1.0  }
   0x5   :  { %845 = vmatprep.subr.mxu0 %v940_v3  ;;  %v779_v26 = vld [vmem:[%s1193_s1 + $0x2] ss:$0 sm:$0xff]  ;;  %v781_v27 = vld [vmem:[%s1193_s1 + $0xa] ss:$0 sm:$0xff]  ;;  %862 = vmatprep.mubr.msk.f32.mxu1 %vm943_vm1, %v940_v3  ;;  %v780_v28 = vld [vmem:[%s1193_s1 + $0x12] ss:$0 sm:$0xff] }
   0x6   :  { %v50_v6 = vadd.s32 1, %v980_v5  ;;  %907 = vset.pattern.permute.xlu0 %v942_v11  ;;  %912 = vpow2.f32 %v765_v13  ;;  %v73_v18 = vsub.s32 1, %v67_v16  ;;  %846 = vmatpush3.msra.mxu0 %v217_v23  ;;  %v782_v29 = vld [vmem:[%s1193_s1 + $0x1a] ss:$0 sm:$0xff]  ;;  %v68_v37 = vsub.s32 0, %v67_v16  ;;  %s946_s21 = smov 126  }
   0x7   :  { %847 = vmatprep.subr.mxu0 %v940_v3  ;;  %vm768_vm2 = vcmp.eq.s32.totalorder %v980_v5, 1  ;;  %v775_v41 = vld [vmem:[%s1193_s1] ss:$0 sm:$0xff]  ;;  %v777_v42 = vld [vmem:[%s1193_s1 + $0x8] ss:$0 sm:$0xff]  ;;  %vm144_vm3 = vcmask 130048  }
   0x8   :  { %v51_v7 = vcvt.s32.f32 %v50_v6  ;;  %848 = vmatpush3.msra.mxu0 %v216_v24  ;;  %855 = vmatpush3.msk.msra.mxu1 %vm768_vm2, %v945_v40  ;;  %v776_v43 = vld [vmem:[%s1193_s1 + $0x10] ss:$0 sm:$0xff]  ;;  %v778_v44 = vld [vmem:[%s1193_s1 + $0x18] ss:$0 sm:$0xff]  ;;  %v787_v50 = vld [vmem:[%s1193_s1 + $0x3] ss:$0 sm:$0xff] }
   0x9   :  { %849 = vmatprep.subr.mxu0 %v940_v3  ;;  %856 = vmatprep.subr.mxu1 %v940_v3  ;;  %v789_v51 = vld [vmem:[%s1193_s1 + $0xb] ss:$0 sm:$0xff]  ;;  %v788_v53 = vld [vmem:[%s1193_s1 + $0x13] ss:$0 sm:$0xff]  ;;  %v790_v54 = vld [vmem:[%s1193_s1 + $0x1b] ss:$0 sm:$0xff] }
   0xa   :  { %850 = vmatpush3.msra.mxu0 %v215_v25  ;;  %857 = vmatpush3.msk.msra.mxu1 %vm768_vm2, %v945_v40  ;;  %vm219_vm4 = vcmask 261120   ;;  %vm766_vm5 = vcmp.eq.s32.totalorder %v980_v5, 0  ;;  %s947_s22 = smov 124   ;;  %v784_v13 = vld [vmem:[%s1193_s1 + $0x11] ss:$0 sm:$0xff]  ;;  %vm378_vm6 = vcmask 1042432  }
   0xb   :  { %865 = vmatprep.subr.mxu0 %v940_v3  ;;  %858 = vmatprep.subr.mxu1 %v940_v3  ;;  %vm375_vm7 = vcmask 23552   ;;  %v580_v5 = vld [vmem:[%s1194_s2 + $0x28] sm:$0xff]  ;;  %s949_s16 = smov [#allocation2]   ;;  %vm749_vm8 = vcmask 8192  }
   0xc   :  { %859 = vmatpush3.msk.msra.mxu1 %vm766_vm5, %v945_v40  ;;  %s757_s17 = sshll.u32 %s949_s16, 4  ;;  %s758_s17 = int_to_ptr.vmem [resolvable:$true] %s757_s17 }
   0xd   :  { %860 = vmatprep.subr.mxu1 %v940_v3  ;;  %s916_s18 = scalar_lea.vmem %s758_s17, 16  ;;  %s920_s0 = scalar_lea.vmem %s758_s17, 32 }
   0xe   :  { %861 = vmatpush3.msk.msra.mxu1 %vm766_vm5, %v945_v40  ;;  %p917_p0 = scmp.ne.s32.totalorder %s758_s17, %s916_s18  ;;  %p921_p1 = scmp.lt.s32.totalorder %s758_s17, %s758_s17 }
   0xf   :  { %870 = vmatprep.subr.mxu1 %v940_v3  ;;  %p922_p2 = scmp.lt.s32.totalorder %s920_s0, %s916_s18 }
  0x11   :  { %p923_p3 = por %p922_p2, %p921_p1 }
  0x13   :  { %v913_v14 = vpop.eup %912  ;;  %p924_p4 = pnand %p923_p3, %p917_p0 }
  0x14   :  { %v20_v15 = vadd.f32 1.0, %v913_v14 }
  0x16   :  { %914 = vrcp.f32 %v20_v15 }
  0x23   :  { %v992_v19 = vpop.eup %914 }
  0x24   :  { %v74_v22 = vrot.slane %v992_v19, %v73_v18  ;;  %v69_v39 = vrot.slane %v992_v19, %v68_v37 }
  0x7d   :  { %v55_v8 = vpop.permute.xlu0 %54 }
  0x7e   :  { %vm57_vm0 = vcmp.eq.f32.partialorder %v55_v8, %v51_v7  ;;  %v783_v7 = vld [vmem:[%s1193_s1 + $0x1] ss:$0 sm:$0xff]  ;;  %v785_v8 = vld [vmem:[%s1193_s1 + $0x9] ss:$0 sm:$0xff] }
  0x7f   :  { %v984_v9 = vsel %vm57_vm0, 1.0, %v940_v3 }
  0x80   :  { %61 = vrot.lane.b32.xlu0 %v984_v9, %s941_s14  ;;  %v65_v10 = vmul.f32 %v984_v9, %v973_v0 }
  0x82   :  { %114 = vperm.xlu1 %905, %v65_v10  }
  0xf2   :  { %v62_v17 = vpop.permute.xlu0 %61 }
  0xf3   :  { %v64_v20 = vmul.f32 %v62_v17, %v973_v0 }
  0xf5   :  { %82 = vperm.xlu1 %905, %v64_v20  }
  0xf9   :  { %906 = vset.pattern.permute.xlu1 %v942_v11 }
  0xfa   :  { %184 = vperm.xlu1 %906, %v74_v22  }
  0xfd   :  { %v115_v30 = vpop.permute.xlu1 %114 }
  0xfe   :  { %v121_v31 = vsub.f32 %v115_v30, %v779_v26  ;;  %v131_v32 = vsub.f32 %v781_v27, %v115_v30  ;;  %908 = vset.pattern.permute.xlu1 %v938_v1 }
 0x100   :  { %v126_v33 = vmul.f32 %v780_v28, %v121_v31  ;;  %v136_v34 = vmul.f32 %v782_v29, %v131_v32  ;;  %v582_v32 = vld [vmem:[%s1194_s2 + $0x38] sm:$0xff] }
 0x102   :  { %v137_v35 = vmin.f32 %v126_v33, %v136_v34  ;;  %v581_v33 = vld [vmem:[%s1194_s2 + $0x30] sm:$0xff]  ;;  %v579_v34 = vld [vmem:[%s1194_s2 + $0x20] sm:$0xff] }
 0x104   :  { %v138_v36 = vmax.f32 %v137_v35, 0.0  ;;  %v803_v35 = vld [vmem:[%s1193_s1 + $0x6] ss:$0 sm:$0xff] }
 0x106   :  { %v139_v38 = vmin.f32 %v138_v36, 1.0  ;;  %v805_v36 = vld [vmem:[%s1193_s1 + $0xe] ss:$0 sm:$0xff] }
 0x108   :  { %141 = vrot.lane.b32.xlu0 %v139_v38, %s944_s5  ;;  %v804_v38 = vld [vmem:[%s1193_s1 + $0x16] ss:$0 sm:$0xff] }
 0x10c   :  { %152 = vperm.xlu0 %907, %v69_v39  }
 0x110   :  { %910 = vset.pattern.permute.xlu0 %v938_v1 }
 0x111   :  { %373 = vrot.lane.b32.xlu0 %v992_v19, %s947_s22 }
 0x170   :  { %v83_v45 = vpop.permute.xlu1 %82 }
 0x171   :  { %v89_v46 = vsub.f32 %v83_v45, %v775_v41  ;;  %v99_v47 = vsub.f32 %v777_v42, %v83_v45  ;;  %v811_v41 = vld [vmem:[%s1193_s1 + $0x7] ss:$0 sm:$0xff]  ;;  %v813_v42 = vld [vmem:[%s1193_s1 + $0xf] ss:$0 sm:$0xff] }
 0x173   :  { %v94_v48 = vmul.f32 %v776_v43, %v89_v46  ;;  %v104_v49 = vmul.f32 %v778_v44, %v99_v47  ;;  %v812_v47 = vld [vmem:[%s1193_s1 + $0x17] ss:$0 sm:$0xff] }
 0x175   :  { %v105_v52 = vmin.f32 %v94_v48, %v104_v49  ;;  %v185_v55 = vpop.permute.xlu1 %184  ;;  %v814_v48 = vld [vmem:[%s1193_s1 + $0x1f] ss:$0 sm:$0xff] }
 0x176   :  { %v191_v56 = vsub.f32 %v185_v55, %v787_v50  ;;  %v201_v57 = vsub.f32 %v789_v51, %v185_v55 }
 0x177   :  { %v106_v58 = vmax.f32 %v105_v52, 0.0 }
 0x178   :  { %v196_v59 = vmul.f32 %v788_v53, %v191_v56  ;;  %v206_v60 = vmul.f32 %v790_v54, %v201_v57 }
 0x179   :  { %v107_v61 = vmin.f32 %v106_v58, 1.0  ;;  %v799_v58 = vld [vmem:[%s1193_s1 + $0x4] ss:$0 sm:$0xff] }
 0x17a   :  { %v142_v62 = vpop.permute.xlu0 %141  ;;  %v207_v63 = vmin.f32 %v196_v59, %v206_v60  ;;  %v801_v59 = vld [vmem:[%s1193_s1 + $0xc] ss:$0 sm:$0xff] }
 0x17b   :  { %v145_v1 = vsel %vm144_vm3, %v107_v61, %v142_v62  ;;  %v800_v62 = vld [vmem:[%s1193_s1 + $0x14] ss:$0 sm:$0xff] }
 0x17c   :  { %852 = vmatmul.mubr.msk.f32.vlgmr.msra.gmra.mxu0 %vm219_vm4, %v145_v1  ;;  %v208_v4 = vmax.f32 %v207_v63, 0.0  ;;  %v802_v63 = vld [vmem:[%s1193_s1 + $0x1c] ss:$0 sm:$0xff] }
 0x17d   :  { %867 = vmatprep.mubr.msk.f32.mxu0 %vm943_vm1, %v940_v3 }
 0x17e   :  { %v209_v6 = vmin.f32 %v208_v4, 1.0 }
 0x180   :  { %211 = vrot.lane.b32.xlu1 %v209_v6, %s944_s5 }
 0x184   :  { %368 = vrot.lane.b32.xlu1 %v973_v0, %s946_s21  ;;  %v786_v0 = vld [vmem:[%s1193_s1 + $0x19] ss:$0 sm:$0xff] }
 0x187   :  { %v153_v10 = vpop.permute.xlu0 %152 }
 0x188   :  { %v159_v11 = vsub.f32 %v153_v10, %v783_v7  ;;  %v169_v12 = vsub.f32 %v785_v8, %v153_v10 }
 0x18a   :  { %v164_v14 = vmul.f32 %v784_v13, %v159_v11  ;;  %v174_v15 = vmul.f32 %v786_v0, %v169_v12  ;;  %v807_v12 = vld [vmem:[%s1193_s1 + $0x5] ss:$0 sm:$0xff]  ;;  %v809_v13 = vld [vmem:[%s1193_s1 + $0xd] ss:$0 sm:$0xff] }
 0x18b   :  { %v374_v30 = vpop.permute.xlu0 %373 }
 0x18c   :  { %v175_v16 = vmin.f32 %v164_v14, %v174_v15  ;;  %v808_v15 = vld [vmem:[%s1193_s1 + $0x15] ss:$0 sm:$0xff] }
 0x18e   :  { %v176_v17 = vmax.f32 %v175_v16, 0.0  ;;  %v810_v16 = vld [vmem:[%s1193_s1 + $0x1d] ss:$0 sm:$0xff] }
 0x190   :  { %v177_v18 = vmin.f32 %v176_v17, 1.0 }
 0x1f2   :  { %v212_v20 = vpop.permute.xlu1 %211 }
 0x1f3   :  { %v214_v21 = vsel %vm144_vm3, %v177_v18, %v212_v20 }
 0x1f6   :  { %v369_v26 = vpop.permute.xlu1 %368 }
 0x23c   :  { %v289_v22 = vpop.f32.mrf.mxu0 }
 0x23d   :  { %v293_v23 = vmul.f32 %v289_v22, %v214_v21 }
 0x23e   :  { %v853_v24 = vpop.f32.mrf.mxu0 }
 0x23f   :  { %863 = vmatmul.mubr.msk.f32.vlgmr.msra.gmra.mxu1 %vm219_vm4, %v293_v23 }
 0x240   :  { %878 = vmatprep.mubr.msk.f32.mxu1 %vm943_vm1, %v940_v3  ;;  %871 = vmatpush3.msra.mxu1 %v582_v32 }
 0x241   :  { %872 = vmatprep.subr.mxu1 %v940_v3 }
 0x242   :  { %873 = vmatpush3.msra.mxu1 %v581_v33 }
 0x243   :  { %874 = vmatprep.subr.mxu1 %v940_v3 }
 0x244   :  { %875 = vmatpush3.msra.mxu1 %v580_v5 }
 0x245   :  { %876 = vmatprep.subr.mxu1 %v940_v3 }
 0x246   :  { %877 = vmatpush3.msra.mxu1 %v579_v34 }
 0x2ff   :  { %v363_v25 = vpop.f32.mrf.mxu1 }
 0x300   :  { %v367_v27 = vmul.f32 %v984_v9, %v363_v25 }
 0x301   :  { %v864_v28 = vpop.f32.mrf.mxu1 }
 0x302   :  { %v371_v29 = vmul.f32 %v369_v26, %v367_v27 }
 0x304   :  { %866 = vmatpush3.msk.msra.mxu0 %vm378_vm6, %v371_v29 }
 0x305   :  { %868 = vmatmul.mubr.msk.f32.vlgmr.msra.gmra.mxu0 %vm375_vm7, %v374_v30  ;;  %881 = vmatprep.subr.mxu0 %v940_v3 }
 0x306   :  { %882 = vmatpush3.msk.msra.mxu0 %vm768_vm2, %v945_v40  ;;  %889 = vmatprep.mubr.msk.f32.mxu0 %vm943_vm1, %v940_v3 }
 0x307   :  { %883 = vmatprep.subr.mxu0 %v940_v3 }
 0x308   :  { %884 = vmatpush3.msk.msra.mxu0 %vm768_vm2, %v945_v40 }
 0x309   :  { %885 = vmatprep.subr.mxu0 %v940_v3 }
 0x30a   :  { %886 = vmatpush3.msk.msra.mxu0 %vm766_vm5, %v945_v40 }
 0x30b   :  { %887 = vmatprep.subr.mxu0 %v940_v3  ;;  %v806_v3 = vld [vmem:[%s1193_s1 + $0x1e] ss:$0 sm:$0xff]  ;;  %s948_s1 = smov 121  }
 0x30c   :  { %888 = vmatpush3.msk.msra.mxu0 %vm766_vm5, %v945_v40 }
 0x3c5   :  { %v448_v9 = vpop.f32.mrf.mxu0 }
 0x3c6   :  { %458 = vperm.xlu1 %908, %v448_v9  }
 0x3c7   :  { %v869_v31 = vpop.f32.mrf.mxu0 }
 0x3ca   :  { %909 = vset.pattern.permute.xlu1 %v939_v2 }
 0x3cb   :  { %521 = vperm.xlu1 %909, %v448_v9  }
 0x441   :  { %v459_v37 = vpop.permute.xlu1 %458 }
 0x442   :  { %v492_v39 = vsub.f32 %v459_v37, %v803_v35  ;;  %v502_v40 = vsub.f32 %v805_v36, %v459_v37  ;;  %v465_v60 = vsub.f32 %v459_v37, %v799_v58  ;;  %v475_v61 = vsub.f32 %v801_v59, %v459_v37 }
 0x444   :  { %v497_v43 = vmul.f32 %v804_v38, %v492_v39  ;;  %v507_v44 = vmul.f32 %v806_v3, %v502_v40  ;;  %v470_v1 = vmul.f32 %v800_v62, %v465_v60  ;;  %v480_v4 = vmul.f32 %v802_v63, %v475_v61 }
 0x446   :  { %v522_v45 = vpop.permute.xlu1 %521  ;;  %v508_v46 = vmin.f32 %v497_v43, %v507_v44  ;;  %v481_v6 = vmin.f32 %v470_v1, %v480_v4 }
 0x447   :  { %v555_v49 = vsub.f32 %v522_v45, %v811_v41  ;;  %v565_v50 = vsub.f32 %v813_v42, %v522_v45  ;;  %v528_v0 = vsub.f32 %v522_v45, %v807_v12  ;;  %v538_v14 = vsub.f32 %v809_v13, %v522_v45 }
 0x448   :  { %v509_v51 = vmax.f32 %v508_v46, 0.0  ;;  %v482_v7 = vmax.f32 %v481_v6, 0.0 }
 0x449   :  { %v560_v52 = vmul.f32 %v812_v47, %v555_v49  ;;  %v570_v53 = vmul.f32 %v814_v48, %v565_v50  ;;  %v533_v17 = vmul.f32 %v808_v15, %v528_v0  ;;  %v543_v18 = vmul.f32 %v810_v16, %v538_v14 }
 0x44a   :  { %v510_v54 = vmin.f32 %v509_v51, 1.0  ;;  %v483_v8 = vmin.f32 %v482_v7, 1.0 }
 0x44b   :  { %v571_v55 = vmin.f32 %v560_v52, %v570_v53  ;;  %v544_v20 = vmin.f32 %v533_v17, %v543_v18 }
 0x44c   :  { %512 = vrot.lane.b32.xlu0 %v510_v54, %s944_s5 }
 0x44d   :  { %v572_v56 = vmax.f32 %v571_v55, 0.0  ;;  %v545_v21 = vmax.f32 %v544_v20, 0.0 }
 0x44f   :  { %v573_v57 = vmin.f32 %v572_v56, 1.0  ;;  %v546_v23 = vmin.f32 %v545_v21, 1.0 }
 0x451   :  { %575 = vrot.lane.b32.xlu0 %v573_v57, %s944_s5 }
 0x4be   :  { %v513_v10 = vpop.permute.xlu0 %512 }
 0x4bf   :  { %v515_v11 = vsel %vm144_vm3, %v483_v8, %v513_v10 }
 0x4c0   :  { %879 = vmatmul.mubr.msk.f32.vlgmr.msra.gmra.mxu1 %vm219_vm4, %v515_v11 }
 0x4c3   :  { %v576_v22 = vpop.permute.xlu0 %575 }
 0x4c4   :  { %v578_v24 = vsel %vm144_vm3, %v546_v23, %v576_v22 }
 0x580   :  { %v652_v25 = vpop.f32.mrf.mxu1 }
 0x581   :  { %v656_v26 = vmul.f32 %v652_v25, %v578_v24 }
 0x582   :  { %v880_v27 = vpop.f32.mrf.mxu1 }
 0x583   :  { %890 = vmatmul.mubr.msk.f32.vlgmr.msra.gmra.mxu0 %vm219_vm4, %v656_v26 }
 0x643   :  { %v726_v28 = vpop.f32.mrf.mxu0 }
 0x644   :  { %732 = vperm.xlu0 %910, %v726_v28   ;;  %737 = vperm.xlu1 %909, %v726_v28  }
 0x645   :  { %v891_v29 = vpop.f32.mrf.mxu0 }
 0x648   :  { %911 = vset.pattern.permute.xlu0 %v939_v2 }
 0x6bf   :  { %v733_v30 = vpop.permute.xlu0 %732  ;;  %v738_v9 = vpop.permute.xlu1 %737 }
 0x6c0   :  { %v740_v31 = vmul.f32 %v992_v19, %v738_v9  ;;  %v735_v32 = vmul.f32 %v992_v19, %v733_v30 }
 0x6c2   :  { %v742_v33 = vrot.slane %v740_v31, 1 }
 0x6c4   :  { %v744_v5 = vadd.f32 %v742_v33, %v735_v32 }
 0x6c6   :  { %746 = vrot.lane.b32.xlu1 %v744_v5, %s948_s1 }
 0x738   :  { %v747_v34 = vpop.permute.xlu1 %746 }
 0x739   :  { %750 = vst.msk [vmem:[#allocation2] sm:$0x1] %vm749_vm8, %v747_v34 }
 0x73a   :  { %927 = shalt.err (!%p924_p4)
}
 0x73b   :  { %760 = dma.vmem_to_hbm [thread:$0]  %s758_s17, 16, %s1195_s3, [#allocation3]  }
 0x73c   :  { %936 = dma.done.wait [#allocation3], 16  }
 0x73d   :  { %937 = vsyncadd [#allocation3], 4294967280 }
 0x73e   :  { %764 = vsyncpa [#allocation3], 1 }

</bundles_post_ra>
